<compile_context>
chip_gen: v5e
topology: v5e:2x2
jax: 0.10.0
libtpu: 0.0.40
codegen_flags: <defaults>
</compile_context>

<pallas_src>
import functools

import jax
import jax.numpy as jnp
from jax.experimental import pallas as pl
from jax.experimental.pallas import tpu as pltpu


def _round_up(n, m):
    return ((n + m - 1) // m) * m


def _mlp_kernel(num_layers, x_ref, w_ref, b_ref, out_ref):
    """Fused MLP forward over one batch tile.

    x_ref  : [T, D]      lane-padded input activations
    w_ref  : [L, D, D]   all layer weights, zero-padded, stacked
    b_ref  : [L, 1, D]   all layer biases,  zero-padded, stacked
    out_ref: [T, 128]    lane-dense output slab; real result lives in lane 0

    Activation schedule (matches the PyTorch module):
      layers 0 .. L-3 : LeakyReLU(0.01)  (hidden layers)
      layer  L-2      : Sigmoid          (MLP output layer)
      layer  L-1      : identity         (final Linear -> 1 head)
    Zero-padded weight rows/cols guarantee padded lanes never leak into the
    real output (sigmoid(0)=0.5 in padded lanes is multiplied by zero rows of
    the final head weight).
    """
    h = x_ref[...].astype(jnp.float32)
    for li in range(num_layers):
        w = w_ref[li]                      # [D, D]
        b = b_ref[li]                      # [1, D]
        h = jnp.dot(h, w, preferred_element_type=jnp.float32) + b
        if li < num_layers - 2:
            h = jnp.where(h >= 0.0, h, 0.01 * h)        # nn.LeakyReLU
        elif li == num_layers - 2:
            # numerically stable sigmoid: exp(-|h|) never overflows
            e = jnp.exp(-jnp.abs(h))
            inv = 1.0 / (1.0 + e)
            h = jnp.where(h >= 0.0, inv, e * inv)       # nn.Sigmoid
        # last layer: no activation
    out_ref[...] = h[:, : out_ref.shape[1]].astype(out_ref.dtype)


def user_mlp_forward(x, params, *, batch_tile=None):
    """Run the fused UserMLPModel forward pass.

    x:      [B, input_dim] float32 feature matrix
    params: list of (W [in, out], b [1, out]) for every Linear, in order:
            hidden layers..., MLP output layer, final head.
    returns [B, 1] float32
    """
    B, in_dim = x.shape
    num_layers = len(params)
    out_dim = params[-1][0].shape[1]              # = 1 (final head)

    # Common lane-padded feature width (full (8,128) tiles, full MXU passes).
    dims = [in_dim] + [w.shape[1] for w, _ in params]
    d_pad = max(_round_up(d, 128) for d in dims)
    out_lanes = min(d_pad, 128)                   # lane-dense output width

    # Batch tiling: whole batch in one step when small; 512-row tiles (>= 2
    # parallel grid steps for v7x's 2 TCs) once B grows. Always a multiple
    # of 8. Per-step VMEM use is < 1 MiB, far under v7x's 32 MiB scoped limit.
    if batch_tile is None:
        batch_tile = _round_up(B, 8) if B <= 512 else 512
    batch_tile = _round_up(batch_tile, 8)
    b_pad = _round_up(B, batch_tile)
    num_tiles = b_pad // batch_tile

    # Pack + zero-pad all parameters into two small slabs (a few hundred KB).
    w_packed = jnp.zeros((num_layers, d_pad, d_pad), jnp.float32)
    b_packed = jnp.zeros((num_layers, 1, d_pad), jnp.float32)
    for li, (w, b) in enumerate(params):
        w_packed = w_packed.at[li, : w.shape[0], : w.shape[1]].set(w)
        b_packed = b_packed.at[li, :, : b.shape[1]].set(b)

    # Zero-pad activations (padded rows are sliced off the output; padded
    # feature lanes hit zero weight rows).
    x_pad = jnp.zeros((b_pad, d_pad), jnp.float32).at[:B, :in_dim].set(x)

    kernel = functools.partial(_mlp_kernel, num_layers)
    out_padded = pl.pallas_call(
        kernel,
        out_shape=jax.ShapeDtypeStruct((b_pad, out_lanes), jnp.float32),
        grid_spec=pltpu.PrefetchScalarGridSpec(
            num_scalar_prefetch=0,
            grid=(num_tiles,),
            in_specs=[
                pl.BlockSpec((batch_tile, d_pad), lambda i: (i, 0)),
                # Grid-invariant param slabs: block index never changes, so
                # they are DMA'd once and stay resident across all steps.
                pl.BlockSpec((num_layers, d_pad, d_pad), lambda i: (0, 0, 0)),
                pl.BlockSpec((num_layers, 1, d_pad), lambda i: (0, 0, 0)),
            ],
            out_specs=pl.BlockSpec((batch_tile, out_lanes), lambda i: (i, 0)),
        ),
        compiler_params=pltpu.CompilerParams(
            dimension_semantics=("parallel",)),
    )(x_pad, w_packed, b_packed)

    return out_padded[:B, :out_dim]


def init_params(key, input_dim, hidden_dims, output_dim):
    """Deterministic PyTorch-Linear-style init: U(-1/sqrt(fan_in), 1/sqrt(fan_in))."""
    dims = [input_dim] + list(hidden_dims) + [output_dim] + [1]
    params = []
    for i in range(len(dims) - 1):
        fan_in, fan_out = dims[i], dims[i + 1]
        key, kw, kb = jax.random.split(key, 3)
        bound = 1.0 / jnp.sqrt(jnp.float32(fan_in))
        w = jax.random.uniform(kw, (fan_in, fan_out), jnp.float32, -bound, bound)
        b = jax.random.uniform(kb, (1, fan_out), jnp.float32, -bound, bound)
        params.append((w, b))
    return params


def _reference(x, params):
    """Pure-JAX reference of the same forward pass (for sanity checking)."""
    h = x
    n = len(params)
    for li, (w, b) in enumerate(params):
        h = h @ w + b
        if li < n - 2:
            h = jnp.where(h >= 0.0, h, 0.01 * h)
        elif li == n - 2:
            h = jax.nn.sigmoid(h)
    return h


if __name__ == "__main__":
    # Shapes consistent with the module's forward:
    # input_dim=32, hidden_dims=(64, 32), output_dim=16 -> y: [B, 1]
    INPUT_DIM, HIDDEN_DIMS, OUTPUT_DIM = 32, (64, 32), 16

    key = jax.random.PRNGKey(0)
    kx, kx2, kp = jax.random.split(key, 3)
    params = init_params(kp, INPUT_DIM, HIDDEN_DIMS, OUTPUT_DIM)

    # Small case (single grid step, whole batch resident in VMEM).
    x = jax.random.normal(kx, (8, INPUT_DIM), jnp.float32)
    y = jax.block_until_ready(user_mlp_forward(x, params))
    y_ref = _reference(x, params)
    assert y.shape == (8, 1)
    assert jnp.allclose(y, y_ref, atol=1e-4, rtol=1e-4)

    # Ragged, multi-tile case (exercises batch padding + 2 parallel grid steps).
    x2 = jax.random.normal(kx2, (700, INPUT_DIM), jnp.float32)
    y2 = jax.block_until_ready(user_mlp_forward(x2, params))
    y2_ref = _reference(x2, params)
    assert y2.shape == (700, 1)
    assert jnp.allclose(y2, y2_ref, atol=1e-4, rtol=1e-4)

    print("KERNEL_OK")
</pallas_src>

<mosaic_0001>
module attributes {stable_mosaic.version = 11 : i64} {
  func.func @_mlp_kernel(%arg0: i32, %arg1: memref<8x128xf32, #tpu.memory_space<vmem>>, %arg2: memref<4x128x128xf32, #tpu.memory_space<vmem>>, %arg3: memref<4x1x128xf32, #tpu.memory_space<vmem>>, %arg4: memref<8x128xf32, #tpu.memory_space<vmem>>) attributes {dimension_semantics = [#tpu.dimension_semantics<parallel>], iteration_bounds = array<i64: 1>, scalar_prefetch = 0 : i64, scratch_operands = 0 : i64, tpu.core_type = #tpu.core_type<tc>, window_params = [{transform_indices = @transform_0, window_bounds = array<i64: 8, 128>}, {pipeline_mode = #tpu.pipeline_mode<synchronous>, transform_indices = @transform_1, window_bounds = array<i64: 4, 128, 128>}, {pipeline_mode = #tpu.pipeline_mode<synchronous>, transform_indices = @transform_2, window_bounds = array<i64: 4, 1, 128>}, {transform_indices = @transform_3, window_bounds = array<i64: 8, 128>}]} {
    %c0 = arith.constant 0 : index
    %c0_0 = arith.constant 0 : index
    %0 = vector.load %arg1[%c0, %c0_0] : memref<8x128xf32, #tpu.memory_space<vmem>>, vector<8x128xf32>
    %c0_1 = arith.constant 0 : index
    %c0_2 = arith.constant 0 : index
    %c0_3 = arith.constant 0 : index
    %1 = vector.load %arg2[%c0_1, %c0_2, %c0_3] : memref<4x128x128xf32, #tpu.memory_space<vmem>>, vector<1x128x128xf32>
    %2 = vector.shape_cast %1 : vector<1x128x128xf32> to vector<128x128xf32>
    %c0_4 = arith.constant 0 : index
    %c0_5 = arith.constant 0 : index
    %c0_6 = arith.constant 0 : index
    %3 = vector.load %arg3[%c0_4, %c0_5, %c0_6] : memref<4x1x128xf32, #tpu.memory_space<vmem>>, vector<1x1x128xf32>
    %4 = vector.shape_cast %3 : vector<1x1x128xf32> to vector<1x128xf32>
    %cst = arith.constant dense<0.000000e+00> : vector<8x128xf32>
    %5 = tpu.matmul %0, %2, %cst {dimension_numbers = #tpu.dot_dimension_numbers<[1], [0], [0], [1], [0, 0, 1, 1], [], []>} : vector<8x128xf32>, vector<128x128xf32>, vector<8x128xf32> -> vector<8x128xf32>
    %6 = vector.broadcast %4 : vector<1x128xf32> to vector<8x128xf32>
    %7 = arith.addf %5, %6 : vector<8x128xf32>
    %cst_7 = arith.constant 0.000000e+00 : f32
    %8 = vector.broadcast %cst_7 : f32 to vector<8x128xf32>
    %9 = arith.cmpf oge, %7, %8 : vector<8x128xf32>
    %cst_8 = arith.constant 0.00999999977 : f32
    %10 = vector.broadcast %cst_8 : f32 to vector<8x128xf32>
    %11 = arith.mulf %10, %7 : vector<8x128xf32>
    %12 = arith.select %9, %7, %11 : vector<8x128xi1>, vector<8x128xf32>
    %c1 = arith.constant 1 : index
    %c0_9 = arith.constant 0 : index
    %c0_10 = arith.constant 0 : index
    %13 = vector.load %arg2[%c1, %c0_9, %c0_10] : memref<4x128x128xf32, #tpu.memory_space<vmem>>, vector<1x128x128xf32>
    %14 = vector.shape_cast %13 : vector<1x128x128xf32> to vector<128x128xf32>
    %c1_11 = arith.constant 1 : index
    %c0_12 = arith.constant 0 : index
    %c0_13 = arith.constant 0 : index
    %15 = vector.load %arg3[%c1_11, %c0_12, %c0_13] : memref<4x1x128xf32, #tpu.memory_space<vmem>>, vector<1x1x128xf32>
    %16 = vector.shape_cast %15 : vector<1x1x128xf32> to vector<1x128xf32>
    %cst_14 = arith.constant dense<0.000000e+00> : vector<8x128xf32>
    %17 = tpu.matmul %12, %14, %cst_14 {dimension_numbers = #tpu.dot_dimension_numbers<[1], [0], [0], [1], [0, 0, 1, 1], [], []>} : vector<8x128xf32>, vector<128x128xf32>, vector<8x128xf32> -> vector<8x128xf32>
    %18 = vector.broadcast %16 : vector<1x128xf32> to vector<8x128xf32>
    %19 = arith.addf %17, %18 : vector<8x128xf32>
    %cst_15 = arith.constant 0.000000e+00 : f32
    %20 = vector.broadcast %cst_15 : f32 to vector<8x128xf32>
    %21 = arith.cmpf oge, %19, %20 : vector<8x128xf32>
    %cst_16 = arith.constant 0.00999999977 : f32
    %22 = vector.broadcast %cst_16 : f32 to vector<8x128xf32>
    %23 = arith.mulf %22, %19 : vector<8x128xf32>
    %24 = arith.select %21, %19, %23 : vector<8x128xi1>, vector<8x128xf32>
    %c2 = arith.constant 2 : index
    %c0_17 = arith.constant 0 : index
    %c0_18 = arith.constant 0 : index
    %25 = vector.load %arg2[%c2, %c0_17, %c0_18] : memref<4x128x128xf32, #tpu.memory_space<vmem>>, vector<1x128x128xf32>
    %26 = vector.shape_cast %25 : vector<1x128x128xf32> to vector<128x128xf32>
    %c2_19 = arith.constant 2 : index
    %c0_20 = arith.constant 0 : index
    %c0_21 = arith.constant 0 : index
    %27 = vector.load %arg3[%c2_19, %c0_20, %c0_21] : memref<4x1x128xf32, #tpu.memory_space<vmem>>, vector<1x1x128xf32>
    %28 = vector.shape_cast %27 : vector<1x1x128xf32> to vector<1x128xf32>
    %cst_22 = arith.constant dense<0.000000e+00> : vector<8x128xf32>
    %29 = tpu.matmul %24, %26, %cst_22 {dimension_numbers = #tpu.dot_dimension_numbers<[1], [0], [0], [1], [0, 0, 1, 1], [], []>} : vector<8x128xf32>, vector<128x128xf32>, vector<8x128xf32> -> vector<8x128xf32>
    %30 = vector.broadcast %28 : vector<1x128xf32> to vector<8x128xf32>
    %31 = arith.addf %29, %30 : vector<8x128xf32>
    %32 = math.absf %31 : vector<8x128xf32>
    %cst_23 = arith.constant 0.000000e+00 : f32
    %33 = vector.broadcast %cst_23 : f32 to vector<8x128xf32>
    %34 = arith.subf %33, %32 : vector<8x128xf32>
    %35 = math.exp %34 : vector<8x128xf32>
    %cst_24 = arith.constant 1.000000e+00 : f32
    %36 = vector.broadcast %cst_24 : f32 to vector<8x128xf32>
    %37 = arith.addf %36, %35 : vector<8x128xf32>
    %cst_25 = arith.constant 1.000000e+00 : f32
    %38 = vector.broadcast %cst_25 : f32 to vector<8x128xf32>
    %39 = arith.divf %38, %37 : vector<8x128xf32>
    %cst_26 = arith.constant 0.000000e+00 : f32
    %40 = vector.broadcast %cst_26 : f32 to vector<8x128xf32>
    %41 = arith.cmpf oge, %31, %40 : vector<8x128xf32>
    %42 = arith.mulf %35, %39 : vector<8x128xf32>
    %43 = arith.select %41, %39, %42 : vector<8x128xi1>, vector<8x128xf32>
    %c3 = arith.constant 3 : index
    %c0_27 = arith.constant 0 : index
    %c0_28 = arith.constant 0 : index
    %44 = vector.load %arg2[%c3, %c0_27, %c0_28] : memref<4x128x128xf32, #tpu.memory_space<vmem>>, vector<1x128x128xf32>
    %45 = vector.shape_cast %44 : vector<1x128x128xf32> to vector<128x128xf32>
    %c3_29 = arith.constant 3 : index
    %c0_30 = arith.constant 0 : index
    %c0_31 = arith.constant 0 : index
    %46 = vector.load %arg3[%c3_29, %c0_30, %c0_31] : memref<4x1x128xf32, #tpu.memory_space<vmem>>, vector<1x1x128xf32>
    %47 = vector.shape_cast %46 : vector<1x1x128xf32> to vector<1x128xf32>
    %cst_32 = arith.constant dense<0.000000e+00> : vector<8x128xf32>
    %48 = tpu.matmul %43, %45, %cst_32 {dimension_numbers = #tpu.dot_dimension_numbers<[1], [0], [0], [1], [0, 0, 1, 1], [], []>} : vector<8x128xf32>, vector<128x128xf32>, vector<8x128xf32> -> vector<8x128xf32>
    %49 = vector.broadcast %47 : vector<1x128xf32> to vector<8x128xf32>
    %50 = arith.addf %48, %49 : vector<8x128xf32>
    %c0_33 = arith.constant 0 : index
    %c0_34 = arith.constant 0 : index
    %51 = vector.load %arg4[%c0_33, %c0_34] : memref<8x128xf32, #tpu.memory_space<vmem>>, vector<8x128xf32>
    tpu.vector_store %arg4[%c0_33, %c0_34], %50 {strides = array<i32>} : memref<8x128xf32, #tpu.memory_space<vmem>>, vector<8x128xf32>,
    return
  }
  func.func @transform_0(%arg0: i32) -> (i32, i32) {
    %c0_i32 = arith.constant 0 : i32
    %c0_i32_0 = arith.constant 0 : i32
    return %arg0, %c0_i32 : i32, i32
  }
  func.func @transform_1(%arg0: i32) -> (i32, i32, i32) {
    %c0_i32 = arith.constant 0 : i32
    %c0_i32_0 = arith.constant 0 : i32
    %c0_i32_1 = arith.constant 0 : i32
    %c0_i32_2 = arith.constant 0 : i32
    return %c0_i32, %c0_i32_0, %c0_i32_1 : i32, i32, i32
  }
  func.func @transform_2(%arg0: i32) -> (i32, i32, i32) {
    %c0_i32 = arith.constant 0 : i32
    %c0_i32_0 = arith.constant 0 : i32
    %c0_i32_1 = arith.constant 0 : i32
    %c0_i32_2 = arith.constant 0 : i32
    return %c0_i32, %c0_i32_0, %c0_i32_1 : i32, i32, i32
  }
  func.func @transform_3(%arg0: i32) -> (i32, i32) {
    %c0_i32 = arith.constant 0 : i32
    %c0_i32_0 = arith.constant 0 : i32
    return %arg0, %c0_i32 : i32, i32
  }
}

</mosaic_0001>

<bundles_post_ra>
// kernel: tpu_custom_call.1
= control target key start
LH: loop header
LB: loop body
LE: loop exit
PB: predicated region body
PF: predicated region fallthrough
CT: control target
= control target key end

     0   :  { %8 = vsyncpa [#allocation3], 0  ;;  %s433_s0 = inlined_call_operand.hbm [shape: f32[8,128], index: 0, kind: input, shape index: {}]   ;;  %s434_s1 = inlined_call_operand.hbm [shape: f32[4,128,128], index: 1, kind: input, shape index: {}]   ;;  %s435_s2 = inlined_call_operand.hbm [shape: f32[4,1,128], index: 2, kind: input, shape index: {}]   ;;  %s436_s3 = inlined_call_operand.hbm [shape: f32[8,128], index: 3, kind: output, shape index: {}]  }
   0x1   :  { %9 = vsyncpa [#allocation6], 0  ;;  %s26_s14 = sshll.u32 %s434_s1, 4  ;;  %s27_s14 = int_to_ptr.hbm [resolvable:$true] %s26_s14 }
   0x2   :  { %10 = vsyncpa [#allocation4], 0  ;;  %s393_s15 = smov [#allocation5]   ;;  %s16_s19 = sshll.u32 %s433_s0, 4  ;;  %s17_s19 = int_to_ptr.hbm [resolvable:$true] %s16_s19 }
   0x3   :  { %s28_s16 = sshll.u32 %s393_s15, 4  ;;  %s394_s20 = smov 128   ;;  %s29_s16 = int_to_ptr.vmem [resolvable:$true] %s28_s16 }
   0x4   :  { %s395_s21 = smov 8   ;;  %s396_s22 = smov [#allocation2]  }
   0x5   :  { %34 = dma.hbm_to_vmem [thread:$0]  %s27_s14, 8192, %s29_s16, [#allocation6], %s394_s20, %s394_s20, %s395_s21  }
   0x6   :  { %s18_s23 = sshll.u32 %s396_s22, 4  ;;  %s39_s26 = sshll.u32 %s435_s2, 4  ;;  %s19_s23 = int_to_ptr.vmem [resolvable:$true] %s18_s23  ;;  %s40_s26 = int_to_ptr.hbm [resolvable:$true] %s39_s26 }
   0x7   :  { %21 = dma.hbm_to_vmem [thread:$0]  %s17_s19, 128, %s19_s23, [#allocation3]  }
   0x8   :  { %s397_s1 = smov [#allocation7]   ;;  %s398_s28 = smov 16  }
   0x9   :  { %s41_s27 = sshll.u32 %s397_s1, 4  ;;  %s399_s29 = smov 1   ;;  %s42_s27 = int_to_ptr.vmem [resolvable:$true] %s41_s27 }
   0xa   :  { %47 = dma.hbm_to_vmem [thread:$0]  %s40_s26, 64, %s42_s27, [#allocation6], %s398_s28, %s398_s28, %s399_s29  }
   0xb   :  { %387 = dma.done.wait [#allocation3], 128  }
   0xc   :  { %388 = vsyncadd [#allocation3], 4294967168 }
   0xd   :  { %389 = dma.done.wait [#allocation6], 8256  }
   0xe   :  { %390 = vsyncadd [#allocation6], 4294959040  ;;  %v76_v0 = vld [vmem:[#allocation5 + $0x78] sm:$0xff]  ;;  %v75_v1 = vld [vmem:[#allocation5 + $0x70] sm:$0xff]  ;;  %s400_s0 = smov [#allocation8]   ;;  %s264_s5 = sshll.u32 %s436_s3, 4  ;;  %s265_s5 = int_to_ptr.hbm [resolvable:$true] %s264_s5 }
   0xf   :  { %81 = vmatpush.msra.mxu0 %v76_v0  ;;  %v74_v2 = vld [vmem:[#allocation5 + $0x68] sm:$0xff]  ;;  %v73_v3 = vld [vmem:[#allocation5 + $0x60] sm:$0xff]  ;;  %v120_v4 = vld [vmem:[#allocation5 + $0xf8] sm:$0xff]  ;;  %s262_s2 = sshll.u32 %s400_s0, 4  ;;  %s263_s2 = int_to_ptr.vmem [resolvable:$true] %s262_s2 }
  0x10   :  { %v72_v5 = vld [vmem:[#allocation5 + $0x58] sm:$0xff]  ;;  %126 = vmatpush.msra.mxu1 %v120_v4  ;;  %v119_v6 = vld [vmem:[#allocation5 + $0xf0] sm:$0xff]  ;;  %v118_v7 = vld [vmem:[#allocation5 + $0xe8] sm:$0xff] }
  0x11   :  { %82 = vmatpush.msra.mxu0 %v75_v1  ;;  %v71_v8 = vld [vmem:[#allocation5 + $0x50] sm:$0xff]  ;;  %v117_v9 = vld [vmem:[#allocation5 + $0xe0] sm:$0xff]  ;;  %v70_v10 = vld [vmem:[#allocation5 + $0x48] sm:$0xff] }
  0x12   :  { %127 = vmatpush.msra.mxu1 %v119_v6  ;;  %v116_v11 = vld [vmem:[#allocation5 + $0xd8] sm:$0xff]  ;;  %v69_v12 = vld [vmem:[#allocation5 + $0x40] sm:$0xff]  ;;  %v115_v13 = vld [vmem:[#allocation5 + $0xd0] sm:$0xff] }
  0x13   :  { %83 = vmatpush.msra.mxu0 %v74_v2  ;;  %v68_v14 = vld [vmem:[#allocation5 + $0x38] sm:$0xff]  ;;  %v114_v15 = vld [vmem:[#allocation5 + $0xc8] sm:$0xff]  ;;  %v67_v16 = vld [vmem:[#allocation5 + $0x30] sm:$0xff] }
  0x14   :  { %128 = vmatpush.msra.mxu1 %v118_v7  ;;  %v113_v17 = vld [vmem:[#allocation5 + $0xc0] sm:$0xff]  ;;  %v66_v18 = vld [vmem:[#allocation5 + $0x28] sm:$0xff]  ;;  %v112_v19 = vld [vmem:[#allocation5 + $0xb8] sm:$0xff] }
  0x15   :  { %84 = vmatpush.msra.mxu0 %v73_v3  ;;  %v65_v20 = vld [vmem:[#allocation5 + $0x20] sm:$0xff]  ;;  %v111_v21 = vld [vmem:[#allocation5 + $0xb0] sm:$0xff]  ;;  %v64_v22 = vld [vmem:[#allocation5 + $0x18] sm:$0xff] }
  0x16   :  { %129 = vmatpush.msra.mxu1 %v117_v9  ;;  %v110_v23 = vld [vmem:[#allocation5 + $0xa8] sm:$0xff]  ;;  %v63_v24 = vld [vmem:[#allocation5 + $0x10] sm:$0xff]  ;;  %v109_v25 = vld [vmem:[#allocation5 + $0xa0] sm:$0xff] }
  0x17   :  { %85 = vmatpush.msra.mxu0 %v72_v5  ;;  %v62_v26 = vld [vmem:[#allocation5 + $0x8] sm:$0xff]  ;;  %v108_v27 = vld [vmem:[#allocation5 + $0x98] sm:$0xff]  ;;  %v61_v28 = vld [vmem:[#allocation5] sm:$0xff] }
  0x18   :  { %130 = vmatpush.msra.mxu1 %v116_v11  ;;  %v60_v29 = vld [vmem:[#allocation2] sm:$0xff]  ;;  %v107_v30 = vld [vmem:[#allocation5 + $0x90] sm:$0xff]  ;;  %v106_v31 = vld [vmem:[#allocation5 + $0x88] sm:$0xff] }
  0x19   :  { %86 = vmatpush.msra.mxu0 %v71_v8  ;;  %v105_v32 = vld [vmem:[#allocation5 + $0x80] sm:$0xff]  ;;  %v165_v33 = vld [vmem:[#allocation5 + $0x178] sm:$0xff]  ;;  %v164_v34 = vld [vmem:[#allocation5 + $0x170] sm:$0xff] }
  0x1a   :  { %131 = vmatpush.msra.mxu1 %v115_v13  ;;  %171 = vmatpush.msra.mxu2 %v165_v33  ;;  %v163_v35 = vld [vmem:[#allocation5 + $0x168] sm:$0xff]  ;;  %v162_v36 = vld [vmem:[#allocation5 + $0x160] sm:$0xff]  ;;  %v161_v37 = vld [vmem:[#allocation5 + $0x158] sm:$0xff] }
  0x1b   :  { %87 = vmatpush.msra.mxu0 %v70_v10  ;;  %v160_v38 = vld [vmem:[#allocation5 + $0x150] sm:$0xff]  ;;  %v159_v39 = vld [vmem:[#allocation5 + $0x148] sm:$0xff]  ;;  %v158_v40 = vld [vmem:[#allocation5 + $0x140] sm:$0xff] }
  0x1c   :  { %132 = vmatpush.msra.mxu1 %v114_v15  ;;  %172 = vmatpush.msra.mxu2 %v164_v34  ;;  %v157_v41 = vld [vmem:[#allocation5 + $0x138] sm:$0xff]  ;;  %v156_v42 = vld [vmem:[#allocation5 + $0x130] sm:$0xff]  ;;  %v155_v43 = vld [vmem:[#allocation5 + $0x128] sm:$0xff] }
  0x1d   :  { %88 = vmatpush.msra.mxu0 %v69_v12  ;;  %v154_v44 = vld [vmem:[#allocation5 + $0x120] sm:$0xff]  ;;  %v153_v45 = vld [vmem:[#allocation5 + $0x118] sm:$0xff]  ;;  %v152_v51 = vld [vmem:[#allocation5 + $0x110] sm:$0xff] }
  0x1e   :  { %133 = vmatpush.msra.mxu1 %v113_v17  ;;  %173 = vmatpush.msra.mxu2 %v163_v35  ;;  %v283_v46 = vld [vmem:[#allocation7] ss:$0 sm:$0xff]  ;;  %v151_v52 = vld [vmem:[#allocation5 + $0x108] sm:$0xff]  ;;  %v284_v54 = vld [vmem:[#allocation7 + $0x1] ss:$0 sm:$0xff] }
  0x1f   :  { %89 = vmatpush.msra.mxu0 %v68_v14  ;;  %v150_v53 = vld [vmem:[#allocation5 + $0x100] sm:$0xff]  ;;  %v230_v59 = vld [vmem:[#allocation5 + $0x1f8] sm:$0xff]  ;;  %v229_v60 = vld [vmem:[#allocation5 + $0x1f0] sm:$0xff] }
  0x20   :  { %134 = vmatpush.msra.mxu1 %v112_v19  ;;  %174 = vmatpush.msra.mxu2 %v162_v36  ;;  %v228_v61 = vld [vmem:[#allocation5 + $0x1e8] sm:$0xff]  ;;  %v227_v62 = vld [vmem:[#allocation5 + $0x1e0] sm:$0xff]  ;;  %v226_v63 = vld [vmem:[#allocation5 + $0x1d8] sm:$0xff] }
  0x21   :  { %90 = vmatpush.msra.mxu0 %v67_v16  ;;  %236 = vmatpush.msra.mxu3 %v230_v59  ;;  %v225_v0 = vld [vmem:[#allocation5 + $0x1d0] sm:$0xff]  ;;  %v224_v1 = vld [vmem:[#allocation5 + $0x1c8] sm:$0xff]  ;;  %v223_v2 = vld [vmem:[#allocation5 + $0x1c0] sm:$0xff] }
  0x22   :  { %135 = vmatpush.msra.mxu1 %v111_v21  ;;  %175 = vmatpush.msra.mxu2 %v161_v37  ;;  %v222_v3 = vld [vmem:[#allocation5 + $0x1b8] sm:$0xff]  ;;  %v221_v4 = vld [vmem:[#allocation5 + $0x1b0] sm:$0xff]  ;;  %v220_v5 = vld [vmem:[#allocation5 + $0x1a8] sm:$0xff] }
  0x23   :  { %91 = vmatpush.msra.mxu0 %v66_v18  ;;  %237 = vmatpush.msra.mxu3 %v229_v60  ;;  %v219_v6 = vld [vmem:[#allocation5 + $0x1a0] sm:$0xff]  ;;  %v218_v7 = vld [vmem:[#allocation5 + $0x198] sm:$0xff]  ;;  %v217_v9 = vld [vmem:[#allocation5 + $0x190] sm:$0xff] }
  0x24   :  { %136 = vmatpush.msra.mxu1 %v110_v23  ;;  %176 = vmatpush.msra.mxu2 %v160_v38  ;;  %v285_v8 = vld [vmem:[#allocation7 + $0x2] ss:$0 sm:$0xff]  ;;  %v216_v11 = vld [vmem:[#allocation5 + $0x188] sm:$0xff] }
  0x25   :  { %92 = vmatpush.msra.mxu0 %v65_v20  ;;  %238 = vmatpush.msra.mxu3 %v228_v61  ;;  %v215_v13 = vld [vmem:[#allocation5 + $0x180] sm:$0xff] }
  0x26   :  { %137 = vmatpush.msra.mxu1 %v109_v25  ;;  %177 = vmatpush.msra.mxu2 %v159_v39 }
  0x27   :  { %93 = vmatpush.msra.mxu0 %v64_v22  ;;  %239 = vmatpush.msra.mxu3 %v227_v62 }
  0x28   :  { %138 = vmatpush.msra.mxu1 %v108_v27  ;;  %178 = vmatpush.msra.mxu2 %v158_v40 }
  0x29   :  { %94 = vmatpush.msra.mxu0 %v63_v24  ;;  %240 = vmatpush.msra.mxu3 %v226_v63 }
  0x2a   :  { %139 = vmatpush.msra.mxu1 %v107_v30  ;;  %179 = vmatpush.msra.mxu2 %v157_v41 }
  0x2b   :  { %95 = vmatpush.msra.mxu0 %v62_v26  ;;  %241 = vmatpush.msra.mxu3 %v225_v0 }
  0x2c   :  { %140 = vmatpush.msra.mxu1 %v106_v31  ;;  %180 = vmatpush.msra.mxu2 %v156_v42  ;;  %v286_v31 = vld [vmem:[#allocation7 + $0x3] ss:$0 sm:$0xff] }
  0x2d   :  { %96 = vmatpush.msra.mxu0 %v61_v28  ;;  %242 = vmatpush.msra.mxu3 %v224_v1 }
  0x2e   :  { %97 = vmatmul.f32.vlgmr.msra.gmra.mxu0 %v60_v29  ;;  %141 = vmatpush.msra.mxu1 %v105_v32 }
  0x2f   :  { %181 = vmatpush.msra.mxu2 %v155_v43  ;;  %243 = vmatpush.msra.mxu3 %v223_v2 }
  0x31   :  { %182 = vmatpush.msra.mxu2 %v154_v44  ;;  %244 = vmatpush.msra.mxu3 %v222_v3 }
  0x33   :  { %183 = vmatpush.msra.mxu2 %v153_v45  ;;  %245 = vmatpush.msra.mxu3 %v221_v4 }
  0x35   :  { %184 = vmatpush.msra.mxu2 %v152_v51  ;;  %246 = vmatpush.msra.mxu3 %v220_v5 }
  0x37   :  { %185 = vmatpush.msra.mxu2 %v151_v52  ;;  %247 = vmatpush.msra.mxu3 %v219_v6 }
  0x39   :  { %186 = vmatpush.msra.mxu2 %v150_v53  ;;  %248 = vmatpush.msra.mxu3 %v218_v7 }
  0x3b   :  { %249 = vmatpush.msra.mxu3 %v217_v9 }
  0x3d   :  { %250 = vmatpush.msra.mxu3 %v216_v11 }
  0x3f   :  { %251 = vmatpush.msra.mxu3 %v215_v13 }
  0xab   :  { %v98_v47 = vpop.f32.mrf.mxu0 }
  0xac   :  { %v99_v48 = vadd.f32 %v283_v46, %v98_v47 }
  0xae   :  { %vm101_vm0 = vcmp.ge.f32.partialorder %v99_v48, 0.0  ;;  %v102_v49 = vmul.f32 0.01, %v99_v48 }
  0xb0   :  { %v103_v50 = vsel %vm101_vm0, %v99_v48, %v102_v49 }
  0xb1   :  { %142 = vmatmul.f32.vlgmr.msra.gmra.mxu1 %v103_v50 }
 0x12e   :  { %v143_v55 = vpop.f32.mrf.mxu1 }
 0x12f   :  { %v144_v56 = vadd.f32 %v284_v54, %v143_v55 }
 0x131   :  { %vm146_vm1 = vcmp.ge.f32.partialorder %v144_v56, 0.0  ;;  %v147_v57 = vmul.f32 0.01, %v144_v56 }
 0x133   :  { %v148_v58 = vsel %vm146_vm1, %v144_v56, %v147_v57 }
 0x134   :  { %187 = vmatmul.f32.vlgmr.msra.gmra.mxu2 %v148_v58 }
 0x1b7   :  { %v188_v10 = vpop.f32.mrf.mxu2 }
 0x1b8   :  { %v189_v12 = vadd.f32 %v285_v8, %v188_v10 }
 0x1ba   :  { %v191_v14 = vand.u32 2147483647, %v189_v12  ;;  %vm211_vm6 = vcmp.ge.f32.partialorder %v189_v12, 0.0 }
 0x1bc   :  { %v192_v15 = vsub.f32 0.0, %v191_v14 }
 0x1be   :  { %v193_v16 = vmul.f32 1.442695, %v192_v15 }
 0x1c0   :  { %287 = vpow2.f32 %v193_v16 }
 0x1c6   :  { %v288_v17 = vpop.eup %287 }
 0x1c7   :  { %v195_v18 = vadd.f32 1.0, %v288_v17 }
 0x1c9   :  { %289 = vrcp.f32 %v195_v18  ;;  %v207_v22 = vand.u32 2147483648, %v195_v18  ;;  %v205_v24 = vand.u32 2147483647, %v195_v18  ;;  %vm201_vm3 = vweird.f32 %v195_v18 }
 0x1cb   :  { %v208_v26 = vor.u32 1.1754944e-38, %v207_v22  ;;  %vm206_vm5 = vcmp.eq.f32.partialorder %v205_v24, 8.507059e+37 }
 0x1cf   :  { %v290_v19 = vpop.eup %289 }
 0x1d0   :  { %v197_v20 = vmul.f32 %v290_v19, %v195_v18  ;;  %vm202_vm2 = vweird.f32 %v290_v19 }
 0x1d1   :  { %vm203_vm4 = vmor %vm201_vm3, %vm202_vm2 }
 0x1d2   :  { %v198_v21 = vsub.f32 1.0, %v197_v20 }
 0x1d4   :  { %v199_v23 = vmul.f32 %v290_v19, %v198_v21 }
 0x1d6   :  { %v200_v25 = vadd.f32 %v290_v19, %v199_v23 }
 0x1d8   :  { %v204_v27 = vsel %vm203_vm4, %v290_v19, %v200_v25 }
 0x1d9   :  { %v209_v28 = vsel %vm206_vm5, %v208_v26, %v204_v27 }
 0x1da   :  { %v212_v29 = vmul.f32 %v288_v17, %v209_v28 }
 0x1dc   :  { %v213_v30 = vsel %vm211_vm6, %v209_v28, %v212_v29 }
 0x1dd   :  { %252 = vmatmul.f32.vlgmr.msra.gmra.mxu3 %v213_v30 }
 0x260   :  { %v253_v32 = vpop.f32.mrf.mxu3 }
 0x261   :  { %v254_v33 = vadd.f32 %v286_v31, %v253_v32 }
 0x263   :  { %256 = vst [vmem:[#allocation8] sm:$0xff] %v254_v33 }
 0x264   :  { %267 = dma.vmem_to_hbm [thread:$0]  %s263_s2, 128, %s265_s5, [#allocation4]  }
 0x265   :  { %391 = dma.done.wait [#allocation4], 128  }
 0x266   :  { %392 = vsyncadd [#allocation4], 4294967168 }
 0x267   :  { %272 = vsyncpa [#allocation3], 1 }
 0x268   :  { %273 = vsyncpa [#allocation6], 1 }
 0x269   :  { %274 = vsyncpa [#allocation4], 1 }

</bundles_post_ra>
